<compile_context>
chip_gen: v7x
topology: tpu7x:2x2x1
jax: 0.10.0
libtpu: 0.0.40
codegen_flags: <defaults>
</compile_context>

<pallas_src>
import jax
import jax.numpy as jnp
from jax.experimental import pallas as pl
from jax.experimental.pallas import tpu as pltpu

# ----------------------------- config ---------------------------------------
NUM_ITEMS = 100
NUM_USERS = 200
ITEM_EMB_DIM = 16
USER_EMB_DIM = 16
X3_FEATS = 358                      # fixed by the module: in = item+user+358
HIDDEN = (50, 50, 50, 50)
OUT_SIZE = 1
BATCH = 8


def _round_up(n, m):
    return (n + m - 1) // m * m


# Lane-padded sizes (everything is 128-lane dense inside the kernel).
HP = 128                                  # padded hidden / output width
ITEM_PAD = _round_up(NUM_ITEMS, 128)      # 128 (one-hot width for items)
USER_PAD = _round_up(NUM_USERS, 128)      # 256 (one-hot width for users)
EMB_PAD = ITEM_PAD + USER_PAD             # 384 combined one-hot width
X3_PAD = _round_up(X3_FEATS, 128)         # 384

# Row offsets inside the single packed bf16 weight buffer [W_ROWS, HP].
OFF_EMB = 0                               # folded (emb @ W1) tables [EMB_PAD, HP]
OFF_W1C = OFF_EMB + EMB_PAD               # W1 x3 slice              [X3_PAD, HP]
OFF_W2 = OFF_W1C + X3_PAD                 # [HP, HP]
OFF_W3 = OFF_W2 + HP
OFF_W4 = OFF_W3 + HP
OFF_W5 = OFF_W4 + HP
W_ROWS = OFF_W5 + HP                      # 1280 rows total (~320 KB bf16)


# ----------------------------- kernel ---------------------------------------
def hybmlp_kernel(ids_ref, x3_ref, w_ref, b_ref, o_ref):
    B = ids_ref.shape[0]
    bf16 = jnp.bfloat16
    f32 = jnp.float32

    ids = ids_ref[...]                                      # [B, 2] int32
    item_id = ids[:, 0:1]                                   # one-hot col in [0,128)
    user_pos = ids[:, 1:2] + ITEM_PAD                       # one-hot col in [128,384)

    # Fused embedding gather: single combined one-hot against the pack-time
    # folded (embedding @ W1-slice) table -> contribution lands in hidden space.
    iota = jax.lax.broadcasted_iota(jnp.int32, (B, EMB_PAD), 1)
    oh = ((iota == item_id) | (iota == user_pos)).astype(bf16)   # [B, EMB_PAD]

    w_emb = w_ref[OFF_EMB:OFF_EMB + EMB_PAD, :]             # bf16 [EMB_PAD, HP]
    w1c = w_ref[OFF_W1C:OFF_W1C + X3_PAD, :]                # bf16 [X3_PAD, HP]
    biases = b_ref[...]                                     # f32  [8, HP]

    x3 = x3_ref[...].astype(bf16)                           # [B, X3_PAD]

    # hidden_layer1 (concat eliminated; emb part pre-folded) + (dropout=id) + relu1
    h = (jnp.dot(oh, w_emb, preferred_element_type=f32)
         + jnp.dot(x3, w1c, preferred_element_type=f32)
         + biases[0:1, :])
    h = jnp.maximum(h, 0.0)

    # hidden layers 2..4 + relu (dropout layers are identity in eval mode)
    for row, off in enumerate((OFF_W2, OFF_W3, OFF_W4), start=1):
        w = w_ref[off:off + HP, :]
        h = jnp.dot(h.astype(bf16), w, preferred_element_type=f32) \
            + biases[row:row + 1, :]
        h = jnp.maximum(h, 0.0)

    # output layer + sigmoid (exp and reciprocal run on the EUP)
    w5 = w_ref[OFF_W5:OFF_W5 + HP, :]
    logits = jnp.dot(h.astype(bf16), w5, preferred_element_type=f32) \
        + biases[4:5, :]
    o_ref[...] = pl.reciprocal(1.0 + jnp.exp(-logits), approx=True)


def hybmlp_forward(ids, x3_pad, packed_w, packed_b):
    """ids:[B,2] int32, x3_pad:[B,X3_PAD] f32, packed_w:[W_ROWS,HP] bf16,
    packed_b:[8,HP] f32 -> [B,HP] f32 (real output is column 0)."""
    B = ids.shape[0]
    vmem = pl.BlockSpec(memory_space=pltpu.MemorySpace.VMEM)
    real_flops = 2 * B * ((ITEM_EMB_DIM + USER_EMB_DIM + X3_FEATS) * HIDDEN[0]
                          + HIDDEN[0] * HIDDEN[1] + HIDDEN[1] * HIDDEN[2]
                          + HIDDEN[2] * HIDDEN[3] + HIDDEN[3] * OUT_SIZE)
    bytes_accessed = (packed_w.size * packed_w.dtype.itemsize
                      + packed_b.size * 4 + ids.size * 4
                      + x3_pad.size * 4 + B * HP * 4)
    return pl.pallas_call(
        hybmlp_kernel,
        out_shape=jax.ShapeDtypeStruct((B, HP), jnp.float32),
        in_specs=[vmem, vmem, vmem, vmem],
        out_specs=vmem,
        cost_estimate=pl.CostEstimate(
            flops=real_flops,
            transcendentals=B * HP,
            bytes_accessed=bytes_accessed),
    )(ids, x3_pad, packed_w, packed_b)


# ----------------------------- params ---------------------------------------
def init_params(key):
    """Deterministic synthetic init mimicking PyTorch layer shapes.
    Weights stored as [in, out] (transposed from PyTorch [out, in])."""
    dims_in = (ITEM_EMB_DIM + USER_EMB_DIM + X3_FEATS,) + HIDDEN
    dims_out = HIDDEN + (OUT_SIZE,)
    params = {}
    keys = jax.random.split(key, 2 + 2 * len(dims_in))
    params["item_emb"] = jax.random.normal(keys[0], (NUM_ITEMS, ITEM_EMB_DIM),
                                           dtype=jnp.float32)
    params["user_emb"] = jax.random.normal(keys[1], (NUM_USERS, USER_EMB_DIM),
                                           dtype=jnp.float32)
    for i, (din, dout) in enumerate(zip(dims_in, dims_out), start=1):
        bound = 1.0 / jnp.sqrt(din)
        kw, kb = keys[2 * i], keys[2 * i + 1]
        params[f"w{i}"] = jax.random.uniform(kw, (din, dout), jnp.float32,
                                             -bound, bound)
        params[f"b{i}"] = jax.random.uniform(kb, (1, dout), jnp.float32,
                                             -bound, bound)
    return params


def pack_params(params):
    """Fold embeddings into the first Linear (f32), pack everything into one
    lane-padded bf16 weight buffer and one f32 [8, HP] bias buffer.
    Zero padding everywhere => exact semantics for the real columns."""
    def pad2(a, rows, cols):
        out = jnp.zeros((rows, cols), jnp.float32)
        return out.at[: a.shape[0], : a.shape[1]].set(a)

    w1 = params["w1"]
    iu = ITEM_EMB_DIM + USER_EMB_DIM
    # Pack-time fold (f32): onehot @ (E @ W1_slice) == (E[id]) @ W1_slice.
    item_fold = params["item_emb"] @ w1[:ITEM_EMB_DIM]          # [NUM_ITEMS, 50]
    user_fold = params["user_emb"] @ w1[ITEM_EMB_DIM:iu]        # [NUM_USERS, 50]

    segs = [
        pad2(item_fold, ITEM_PAD, HP),
        pad2(user_fold, USER_PAD, HP),
        pad2(w1[iu:], X3_PAD, HP),
        pad2(params["w2"], HP, HP),
        pad2(params["w3"], HP, HP),
        pad2(params["w4"], HP, HP),
        pad2(params["w5"], HP, HP),
    ]
    packed_w = jnp.concatenate(segs, axis=0).astype(jnp.bfloat16)
    assert packed_w.shape == (W_ROWS, HP)

    packed_b = jnp.zeros((8, HP), jnp.float32)
    for i in range(5):
        bi = params[f"b{i + 1}"][0]
        packed_b = packed_b.at[i, : bi.shape[0]].set(bi)
    return packed_w, packed_b


# ----------------------------- wrappers --------------------------------------
@jax.jit
def hybmlp(x1, x2, x3, packed_w, packed_b):
    ids = jnp.stack([x1.astype(jnp.int32), x2.astype(jnp.int32)], axis=1)
    x3p = jnp.pad(x3.astype(jnp.float32),
                  ((0, 0), (0, X3_PAD - X3_FEATS)))
    out = hybmlp_forward(ids, x3p, packed_w, packed_b)
    return out[:, :OUT_SIZE]                                # real column 0


def reference_forward(x1, x2, x3, params):
    """Pure-JAX f32 reference matching the PyTorch module (eval mode)."""
    item_vec = params["item_emb"][x1]
    user_vec = params["user_emb"][x2]
    h = jnp.concatenate([item_vec, user_vec, x3], axis=1)
    for i in range(1, 5):
        h = jnp.maximum(h @ params[f"w{i}"] + params[f"b{i}"], 0.0)
    out = h @ params["w5"] + params["b5"]
    return jax.nn.sigmoid(out)


if __name__ == "__main__":
    key = jax.random.PRNGKey(0)
    kp, k1, k2, k3 = jax.random.split(key, 4)
    params = init_params(kp)
    packed_w, packed_b = pack_params(params)

    x1 = jax.random.randint(k1, (BATCH,), 0, NUM_ITEMS, dtype=jnp.int32)
    x2 = jax.random.randint(k2, (BATCH,), 0, NUM_USERS, dtype=jnp.int32)
    x3 = jax.random.normal(k3, (BATCH, X3_FEATS), dtype=jnp.float32)

    out = hybmlp(x1, x2, x3, packed_w, packed_b)
    jax.block_until_ready(out)
    assert out.shape == (BATCH, OUT_SIZE)

    ref = reference_forward(x1, x2, x3, params)
    max_err = float(jnp.max(jnp.abs(out - ref)))
    assert max_err < 5e-2, f"max abs error vs f32 reference: {max_err}"
    assert bool(jnp.all((out >= -1e-3) & (out <= 1.0 + 1e-3)))
    print("KERNEL_OK")
</pallas_src>

<mosaic_0001>
module attributes {stable_mosaic.version = 11 : i64} {
  func.func @hybmlp_kernel(%arg0: memref<8x2xi32, #tpu.memory_space<vmem>>, %arg1: memref<8x384xf32, #tpu.memory_space<vmem>>, %arg2: memref<1280x128xbf16, #tpu.memory_space<vmem>>, %arg3: memref<8x128xf32, #tpu.memory_space<vmem>>, %arg4: memref<8x128xf32, #tpu.memory_space<vmem>>) attributes {dimension_semantics = [], scalar_prefetch = 0 : i64, scratch_operands = 0 : i64, tpu.core_type = #tpu.core_type<tc>} {
    %c0 = arith.constant 0 : index
    %c0_0 = arith.constant 0 : index
    %0 = vector.load %arg0[%c0, %c0_0] : memref<8x2xi32, #tpu.memory_space<vmem>>, vector<8x2xi32>
    %1 = vector.extract_strided_slice %0 {offsets = [0, 0], sizes = [8, 1], strides = [1, 1]} : vector<8x2xi32> to vector<8x1xi32>
    %2 = vector.extract_strided_slice %0 {offsets = [0, 1], sizes = [8, 1], strides = [1, 1]} : vector<8x2xi32> to vector<8x1xi32>
    %c128_i32 = arith.constant 128 : i32
    %3 = vector.broadcast %c128_i32 : i32 to vector<8x1xi32>
    %4 = arith.addi %2, %3 : vector<8x1xi32>
    %5 = tpu.iota {dimensions = array<i32: 1>} : vector<8x384xi32>
    %6 = vector.broadcast %1 : vector<8x1xi32> to vector<8x384xi32>
    %7 = arith.cmpi eq, %5, %6 : vector<8x384xi32>
    %8 = vector.broadcast %4 : vector<8x1xi32> to vector<8x384xi32>
    %9 = arith.cmpi eq, %5, %8 : vector<8x384xi32>
    %10 = arith.ori %7, %9 : vector<8x384xi1>
    %11 = arith.extui %10 : vector<8x384xi1> to vector<8x384xi32>
    %12 = arith.sitofp %11 : vector<8x384xi32> to vector<8x384xf32>
    %13 = arith.truncf %12 : vector<8x384xf32> to vector<8x384xbf16>
    %c0_1 = arith.constant 0 : index
    %c0_2 = arith.constant 0 : index
    %14 = vector.load %arg2[%c0_1, %c0_2] : memref<1280x128xbf16, #tpu.memory_space<vmem>>, vector<384x128xbf16>
    %c384 = arith.constant 384 : index
    %c0_3 = arith.constant 0 : index
    %15 = vector.load %arg2[%c384, %c0_3] : memref<1280x128xbf16, #tpu.memory_space<vmem>>, vector<384x128xbf16>
    %c0_4 = arith.constant 0 : index
    %c0_5 = arith.constant 0 : index
    %16 = vector.load %arg3[%c0_4, %c0_5] : memref<8x128xf32, #tpu.memory_space<vmem>>, vector<8x128xf32>
    %c0_6 = arith.constant 0 : index
    %c0_7 = arith.constant 0 : index
    %17 = vector.load %arg1[%c0_6, %c0_7] : memref<8x384xf32, #tpu.memory_space<vmem>>, vector<8x384xf32>
    %18 = arith.truncf %17 : vector<8x384xf32> to vector<8x384xbf16>
    %cst = arith.constant dense<0.000000e+00> : vector<8x128xf32>
    %19 = tpu.matmul %13, %14, %cst {dimension_numbers = #tpu.dot_dimension_numbers<[1], [0], [0], [1], [0, 0, 1, 1], [], []>} : vector<8x384xbf16>, vector<384x128xbf16>, vector<8x128xf32> -> vector<8x128xf32>
    %cst_8 = arith.constant dense<0.000000e+00> : vector<8x128xf32>
    %20 = tpu.matmul %18, %15, %cst_8 {dimension_numbers = #tpu.dot_dimension_numbers<[1], [0], [0], [1], [0, 0, 1, 1], [], []>} : vector<8x384xbf16>, vector<384x128xbf16>, vector<8x128xf32> -> vector<8x128xf32>
    %21 = arith.addf %19, %20 : vector<8x128xf32>
    %22 = vector.extract_strided_slice %16 {offsets = [0, 0], sizes = [1, 128], strides = [1, 1]} : vector<8x128xf32> to vector<1x128xf32>
    %23 = vector.broadcast %22 : vector<1x128xf32> to vector<8x128xf32>
    %24 = arith.addf %21, %23 : vector<8x128xf32>
    %cst_9 = arith.constant 0.000000e+00 : f32
    %25 = vector.broadcast %cst_9 : f32 to vector<8x128xf32>
    %26 = arith.maximumf %24, %25 : vector<8x128xf32>
    %c768 = arith.constant 768 : index
    %c0_10 = arith.constant 0 : index
    %27 = vector.load %arg2[%c768, %c0_10] : memref<1280x128xbf16, #tpu.memory_space<vmem>>, vector<128x128xbf16>
    %28 = arith.truncf %26 : vector<8x128xf32> to vector<8x128xbf16>
    %cst_11 = arith.constant dense<0.000000e+00> : vector<8x128xf32>
    %29 = tpu.matmul %28, %27, %cst_11 {dimension_numbers = #tpu.dot_dimension_numbers<[1], [0], [0], [1], [0, 0, 1, 1], [], []>} : vector<8x128xbf16>, vector<128x128xbf16>, vector<8x128xf32> -> vector<8x128xf32>
    %30 = vector.extract_strided_slice %16 {offsets = [1, 0], sizes = [1, 128], strides = [1, 1]} : vector<8x128xf32> to vector<1x128xf32>
    %31 = vector.broadcast %30 : vector<1x128xf32> to vector<8x128xf32>
    %32 = arith.addf %29, %31 : vector<8x128xf32>
    %cst_12 = arith.constant 0.000000e+00 : f32
    %33 = vector.broadcast %cst_12 : f32 to vector<8x128xf32>
    %34 = arith.maximumf %32, %33 : vector<8x128xf32>
    %c896 = arith.constant 896 : index
    %c0_13 = arith.constant 0 : index
    %35 = vector.load %arg2[%c896, %c0_13] : memref<1280x128xbf16, #tpu.memory_space<vmem>>, vector<128x128xbf16>
    %36 = arith.truncf %34 : vector<8x128xf32> to vector<8x128xbf16>
    %cst_14 = arith.constant dense<0.000000e+00> : vector<8x128xf32>
    %37 = tpu.matmul %36, %35, %cst_14 {dimension_numbers = #tpu.dot_dimension_numbers<[1], [0], [0], [1], [0, 0, 1, 1], [], []>} : vector<8x128xbf16>, vector<128x128xbf16>, vector<8x128xf32> -> vector<8x128xf32>
    %38 = vector.extract_strided_slice %16 {offsets = [2, 0], sizes = [1, 128], strides = [1, 1]} : vector<8x128xf32> to vector<1x128xf32>
    %39 = vector.broadcast %38 : vector<1x128xf32> to vector<8x128xf32>
    %40 = arith.addf %37, %39 : vector<8x128xf32>
    %cst_15 = arith.constant 0.000000e+00 : f32
    %41 = vector.broadcast %cst_15 : f32 to vector<8x128xf32>
    %42 = arith.maximumf %40, %41 : vector<8x128xf32>
    %c1024 = arith.constant 1024 : index
    %c0_16 = arith.constant 0 : index
    %43 = vector.load %arg2[%c1024, %c0_16] : memref<1280x128xbf16, #tpu.memory_space<vmem>>, vector<128x128xbf16>
    %44 = arith.truncf %42 : vector<8x128xf32> to vector<8x128xbf16>
    %cst_17 = arith.constant dense<0.000000e+00> : vector<8x128xf32>
    %45 = tpu.matmul %44, %43, %cst_17 {dimension_numbers = #tpu.dot_dimension_numbers<[1], [0], [0], [1], [0, 0, 1, 1], [], []>} : vector<8x128xbf16>, vector<128x128xbf16>, vector<8x128xf32> -> vector<8x128xf32>
    %46 = vector.extract_strided_slice %16 {offsets = [3, 0], sizes = [1, 128], strides = [1, 1]} : vector<8x128xf32> to vector<1x128xf32>
    %47 = vector.broadcast %46 : vector<1x128xf32> to vector<8x128xf32>
    %48 = arith.addf %45, %47 : vector<8x128xf32>
    %cst_18 = arith.constant 0.000000e+00 : f32
    %49 = vector.broadcast %cst_18 : f32 to vector<8x128xf32>
    %50 = arith.maximumf %48, %49 : vector<8x128xf32>
    %c1152 = arith.constant 1152 : index
    %c0_19 = arith.constant 0 : index
    %51 = vector.load %arg2[%c1152, %c0_19] : memref<1280x128xbf16, #tpu.memory_space<vmem>>, vector<128x128xbf16>
    %52 = arith.truncf %50 : vector<8x128xf32> to vector<8x128xbf16>
    %cst_20 = arith.constant dense<0.000000e+00> : vector<8x128xf32>
    %53 = tpu.matmul %52, %51, %cst_20 {dimension_numbers = #tpu.dot_dimension_numbers<[1], [0], [0], [1], [0, 0, 1, 1], [], []>} : vector<8x128xbf16>, vector<128x128xbf16>, vector<8x128xf32> -> vector<8x128xf32>
    %54 = vector.extract_strided_slice %16 {offsets = [4, 0], sizes = [1, 128], strides = [1, 1]} : vector<8x128xf32> to vector<1x128xf32>
    %55 = vector.broadcast %54 : vector<1x128xf32> to vector<8x128xf32>
    %56 = arith.addf %53, %55 : vector<8x128xf32>
    %cst_21 = arith.constant 0.000000e+00 : f32
    %57 = vector.broadcast %cst_21 : f32 to vector<8x128xf32>
    %58 = arith.subf %57, %56 : vector<8x128xf32>
    %59 = math.exp %58 : vector<8x128xf32>
    %cst_22 = arith.constant 1.000000e+00 : f32
    %60 = vector.broadcast %cst_22 : f32 to vector<8x128xf32>
    %61 = arith.addf %60, %59 : vector<8x128xf32>
    %62 = tpu.reciprocal %61 {approx = true} : vector<8x128xf32> -> vector<8x128xf32>
    %c0_23 = arith.constant 0 : index
    %c0_24 = arith.constant 0 : index
    %63 = vector.load %arg4[%c0_23, %c0_24] : memref<8x128xf32, #tpu.memory_space<vmem>>, vector<8x128xf32>
    tpu.vector_store %arg4[%c0_23, %c0_24], %62 {strides = array<i32>} : memref<8x128xf32, #tpu.memory_space<vmem>>, vector<8x128xf32>,
    return
  }
}

</mosaic_0001>

<bundles_post_ra>
// kernel: hybmlp.1
= control target key start
LH: loop header
LB: loop body
LE: loop exit
PB: predicated region body
PF: predicated region fallthrough
CT: control target
= control target key end

     0   :  { %9 = vsyncpa [#allocation3], 0  ;;  %s1494_s15 = smov [#allocation2]   ;;  %s1633_s0 = inlined_call_operand.vmem [shape: s32[8,2], index: 0, kind: input, shape index: {}]   ;;  %s1634_s1 = inlined_call_operand.vmem [shape: f32[8,384], index: 1, kind: input, shape index: {}]   ;;  %s1635_s2 = inlined_call_operand.hbm [shape: bf16[1280,128], index: 2, kind: input, shape index: {}]   ;;  %s1636_s3 = inlined_call_operand.vmem [shape: f32[8,128], index: 3, kind: input, shape index: {}]   ;;  %s1637_s4 = inlined_call_operand.vmem [shape: f32[8,128], index: 4, kind: output, shape index: {}]  }
   0x1   :  { %s19_s16 = sshll.u32 %s1494_s15, 4  ;;  %s1470_s19 = scalar_lea.hbm %s1635_s2, 10240  ;;  %s20_s16 = int_to_ptr.vmem [resolvable:$true] %s19_s16 }
   0x2   :  { %p1471_p0 = scmp.ne.s32.totalorder %s1635_s2, %s1470_s19  ;;  %p1474_p1 = scmp.lt.u32.totalorder %s1470_s19, %s1635_s2 }
   0x4   :  { %p1476_p2 = pnand %p1474_p1, %p1471_p0 }
   0x6   :  { %1479 = shalt.err (!%p1476_p2)
}
   0x7   :  { %s1480_s24 = scalar_lea.vmem %s20_s16, 10240  ;;  %p1485_p4 = scmp.lt.s32.totalorder %s20_s16, %s20_s16 }
   0x8   :  { %p1481_p3 = scmp.ne.s32.totalorder %s20_s16, %s1480_s24  ;;  %p1486_p5 = scmp.lt.s32.totalorder %s1480_s24, %s1480_s24 }
   0xa   :  { %p1487_p6 = por %p1486_p5, %p1485_p4 }
   0xc   :  { %p1488_p7 = pnand %p1487_p6, %p1481_p3 }
   0xe   :  { %1491 = shalt.err (!%p1488_p7)
}
   0xf   :  { %s1495_s25 = smov 64   ;;  %s1496_s26 = smov 4  }
  0x10   :  { %25 = dma.hbm_to_vmem [thread:$0]  %s1635_s2, 10240, %s20_s16, [#allocation3], %s1495_s25, %s1495_s25, %s1496_s26  }
  0x11   :  { %1492 = dma.done.wait [#allocation3], 10240  }
  0x12   :  { %1493 = vsyncadd [#allocation3], 4294957056  ;;  %v1497_v0 = vmov 0   ;;  %v1498_v1 = vmov 0.0   ;;  %vm1499_vm0 = vmmov 0   ;;  %v32_v2 = vld [vmem:[%s1633_s0] sm:$0xff]  ;;  %v34_v59 = vlaneseq }
  0x13   :  { %1384 = vset.pattern.permute.xlu0 %v1497_v0  ;;  %1256 = vmatprep.subr.bf16.mxu1 %v1498_v1  ;;  %v1386_v3 = vld [vmem:[#allocation2 + $0x100] sm:$0xff]   ;;  %v33_v4 = vadd.s32 128, %v32_v2  ;;  %v1389_v7 = vld [vmem:[#allocation2 + $0x108] sm:$0xff]   ;;  %v1500_v8 = vmov 1   ;;  %v1392_v11 = vld [vmem:[#allocation2 + $0x110] sm:$0xff]  }
  0x14   :  { %1272 = vmatprep.mubr.msk.bf16.mxu1 %vm1499_vm0, %v1498_v1  ;;  %39 = vperm.xlu0 %1384, %v32_v2   ;;  %v1387_v5 = vld [vmem:[#allocation2 + $0xc0] sm:$0xff]   ;;  %v1390_v9 = vld [vmem:[#allocation2 + $0xc8] sm:$0xff]   ;;  %v1393_v12 = vld [vmem:[#allocation2 + $0xd0] sm:$0xff]   ;;  %v35_v60 = vand.u32 127, %v34_v59 }
  0x15   :  { %1158 = vmatprep.subr.bf16.mxu0 %v1386_v3  ;;  %v1388_v6 = vld [vmem:[#allocation2 + $0x140] sm:$0xff]   ;;  %v1391_v10 = vld [vmem:[#allocation2 + $0x148] sm:$0xff]   ;;  %v1394_v13 = vld [vmem:[#allocation2 + $0x150] sm:$0xff]   ;;  %v1501_v3 = vmov 1.0|1.0  }
  0x16   :  { %1159 = vmatpush3.bf16.msra.mxu0 %v1387_v5  ;;  %1257 = vmatpush3.bf16.msra.mxu1 %v1388_v6  ;;  %v1395_v14 = vld [vmem:[#allocation2 + $0x118] sm:$0xff]   ;;  %v1398_v17 = vld [vmem:[#allocation2 + $0x120] sm:$0xff]   ;;  %v1401_v20 = vld [vmem:[#allocation2 + $0x128] sm:$0xff]   ;;  %v36_v62 = vadd.s32 128, %v35_v60  ;;  %v37_v63 = vadd.s32 256, %v35_v60 }
  0x17   :  { %1160 = vmatprep.subr.bf16.mxu0 %v1389_v7  ;;  %1258 = vmatprep.subr.bf16.mxu1 %v1498_v1  ;;  %v1396_v15 = vld [vmem:[#allocation2 + $0xd8] sm:$0xff]   ;;  %v1399_v18 = vld [vmem:[#allocation2 + $0xe0] sm:$0xff]   ;;  %v1402_v21 = vld [vmem:[#allocation2 + $0xe8] sm:$0xff]  }
  0x18   :  { %1385 = vset.pattern.permute.xlu0 %v1500_v8  ;;  %v1397_v16 = vld [vmem:[#allocation2 + $0x158] sm:$0xff]   ;;  %v1400_v19 = vld [vmem:[#allocation2 + $0x160] sm:$0xff]   ;;  %v1403_v22 = vld [vmem:[#allocation2 + $0x168] sm:$0xff]  }
  0x19   :  { %45 = vperm.xlu0 %1385, %v33_v4   ;;  %v1404_v23 = vld [vmem:[#allocation2 + $0x130] sm:$0xff]   ;;  %v160_v26 = vld [vmem:[%s1634_s1 + $0x8] sm:$0xff]  ;;  %v1407_v27 = vld [vmem:[#allocation2 + $0x138] sm:$0xff]  }
  0x1a   :  { %1161 = vmatpush3.bf16.msra.mxu0 %v1390_v9  ;;  %1259 = vmatpush3.bf16.msra.mxu1 %v1391_v10  ;;  %v1405_v24 = vld [vmem:[#allocation2 + $0xf0] sm:$0xff]   ;;  %v163_v28 = vpack.c.bf16 %v160_v26, %v160_v26  ;;  %v1408_v29 = vld [vmem:[#allocation2 + $0xf8] sm:$0xff]   ;;  %v159_v31 = vld [vmem:[%s1634_s1] sm:$0xff] }
  0x1b   :  { %1162 = vmatprep.subr.bf16.mxu0 %v1392_v11  ;;  %1260 = vmatprep.subr.bf16.mxu1 %v1498_v1  ;;  %v1406_v25 = vld [vmem:[#allocation2 + $0x170] sm:$0xff]   ;;  %v1409_v30 = vld [vmem:[#allocation2 + $0x178] sm:$0xff]   ;;  %v1410_v33 = vld [vmem:[#allocation2 + $0x40] sm:$0xff]   ;;  %v162_v34 = vpack.c.bf16 %v159_v31, %v159_v31 }
  0x1c   :  { %341 = vmatprep.mubr.bf16.mxu0 %v163_v28  ;;  %v161_v32 = vld [vmem:[%s1634_s1 + $0x10] sm:$0xff]  ;;  %v1411_v35 = vld [vmem:[#allocation2 + $0x80] sm:$0xff]   ;;  %v1413_v38 = vld [vmem:[#allocation2 + $0x48] sm:$0xff]  }
  0x1d   :  { %v164_v36 = vpack.c.bf16 %v161_v32, %v161_v32  ;;  %v1412_v37 = vld [vmem:[#allocation2] sm:$0xff]   ;;  %v1414_v39 = vld [vmem:[#allocation2 + $0x88] sm:$0xff]   ;;  %v1416_v41 = vld [vmem:[#allocation2 + $0x50] sm:$0xff]  }
  0x1e   :  { %1163 = vmatpush3.bf16.msra.mxu0 %v1393_v12  ;;  %1261 = vmatpush3.bf16.msra.mxu1 %v1394_v13  ;;  %v1415_v40 = vld [vmem:[#allocation2 + $0x8] sm:$0xff]   ;;  %v1417_v42 = vld [vmem:[#allocation2 + $0x90] sm:$0xff]   ;;  %v1419_v44 = vld [vmem:[#allocation2 + $0x58] sm:$0xff]  }
  0x1f   :  { %1164 = vmatprep.subr.bf16.mxu0 %v1395_v14  ;;  %1262 = vmatprep.subr.bf16.mxu1 %v1498_v1  ;;  %v1418_v43 = vld [vmem:[#allocation2 + $0x10] sm:$0xff]   ;;  %v1420_v45 = vld [vmem:[#allocation2 + $0x98] sm:$0xff]   ;;  %v1422_v47 = vld [vmem:[#allocation2 + $0x60] sm:$0xff]  }
  0x20   :  { %v1421_v46 = vld [vmem:[#allocation2 + $0x18] sm:$0xff]   ;;  %v1423_v48 = vld [vmem:[#allocation2 + $0xa0] sm:$0xff]   ;;  %v1425_v50 = vld [vmem:[#allocation2 + $0x68] sm:$0xff]  }
  0x21   :  { %v1424_v49 = vld [vmem:[#allocation2 + $0x20] sm:$0xff]   ;;  %v1427_v51 = vld [vmem:[#allocation2 + $0x28] sm:$0xff]   ;;  %v1428_v53 = vld [vmem:[#allocation2 + $0x70] sm:$0xff]  }
  0x22   :  { %1165 = vmatpush3.bf16.msra.mxu0 %v1396_v15  ;;  %1263 = vmatpush3.bf16.msra.mxu1 %v1397_v16  ;;  %v1426_v52 = vld [vmem:[#allocation2 + $0xa8] sm:$0xff]   ;;  %v1430_v54 = vld [vmem:[#allocation2 + $0x30] sm:$0xff]   ;;  %v1431_v56 = vld [vmem:[#allocation2 + $0x78] sm:$0xff]  }
  0x23   :  { %1166 = vmatprep.subr.bf16.mxu0 %v1398_v17  ;;  %1264 = vmatprep.subr.bf16.mxu1 %v1498_v1  ;;  %v1429_v55 = vld [vmem:[#allocation2 + $0xb0] sm:$0xff]   ;;  %v1433_v57 = vld [vmem:[#allocation2 + $0x38] sm:$0xff]   ;;  %v1434_v2 = vld [vmem:[#allocation2 + $0x180] sm:$0xff]  }
  0x24   :  { %v1432_v58 = vld [vmem:[#allocation2 + $0xb8] sm:$0xff]   ;;  %v1435_v4 = vld [vmem:[#allocation2 + $0x188] sm:$0xff]   ;;  %v1436_v5 = vld [vmem:[#allocation2 + $0x190] sm:$0xff]  }
  0x25   :  { %v1437_v6 = vld [vmem:[#allocation2 + $0x198] sm:$0xff]   ;;  %v1438_v7 = vld [vmem:[#allocation2 + $0x1a0] sm:$0xff]   ;;  %v1439_v8 = vld [vmem:[#allocation2 + $0x1a8] sm:$0xff]  }
  0x26   :  { %1167 = vmatpush3.bf16.msra.mxu0 %v1399_v18  ;;  %1265 = vmatpush3.bf16.msra.mxu1 %v1400_v19  ;;  %v1440_v9 = vld [vmem:[#allocation2 + $0x1b0] sm:$0xff]   ;;  %v1441_v10 = vld [vmem:[#allocation2 + $0x1b8] sm:$0xff]   ;;  %v1442_v11 = vld [vmem:[#allocation2 + $0x1c0] sm:$0xff]  }
  0x27   :  { %1168 = vmatprep.subr.bf16.mxu0 %v1401_v20  ;;  %1266 = vmatprep.subr.bf16.mxu1 %v1498_v1  ;;  %v1443_v12 = vld [vmem:[#allocation2 + $0x1c8] sm:$0xff]   ;;  %v1444_v13 = vld [vmem:[#allocation2 + $0x1d0] sm:$0xff]   ;;  %v1445_v17 = vld [vmem:[#allocation2 + $0x1d8] sm:$0xff]  }
  0x28   :  { %v1447_v26 = vld [vmem:[#allocation2 + $0x1e8] sm:$0xff]   ;;  %v1599_v31 = vld [vmem:[%s1636_s3] sm:$0xff] }
  0x2a   :  { %1169 = vmatpush3.bf16.msra.mxu0 %v1402_v21  ;;  %1267 = vmatpush3.bf16.msra.mxu1 %v1403_v22 }
  0x2b   :  { %1170 = vmatprep.subr.bf16.mxu0 %v1404_v23  ;;  %1268 = vmatprep.subr.bf16.mxu1 %v1498_v1 }
  0x2e   :  { %1171 = vmatpush3.bf16.msra.mxu0 %v1405_v24  ;;  %1269 = vmatpush3.bf16.msra.mxu1 %v1406_v25  ;;  %v1446_v25 = vld [vmem:[#allocation2 + $0x1e0] sm:$0xff]  }
  0x2f   :  { %1172 = vmatprep.subr.bf16.mxu0 %v1407_v27  ;;  %1270 = vmatprep.subr.bf16.mxu1 %v1498_v1  ;;  %v1593_v27 = vshrl.u32 %v34_v59, 7 }
  0x32   :  { %1173 = vmatpush3.bf16.msra.mxu0 %v1408_v29  ;;  %1271 = vmatpush3.bf16.msra.mxu1 %v1409_v30  ;;  %v615_v29 = vsub.s32 0, %v1593_v27 }
  0x33   :  { %1189 = vmatprep.subr.bf16.mxu0 %v1410_v33  ;;  %1276 = vmatprep.subr.bf16.mxu1 %v1498_v1 }
  0x35   :  { %342 = vmatmul.mubr.bf16.vlgmr.msra.gmra.mrb[0].mxu0 %v162_v34  ;;  %1273 = vmatmul.mubr.bf16.vlgmr.msra.gmra.mrb[0].mxu1 %v164_v36 }
  0x36   :  { %1190 = vmatpush3.bf16.msra.mxu0 %v1412_v37  ;;  %1277 = vmatpush3.bf16.msra.mxu1 %v1411_v35 }
  0x37   :  { %1191 = vmatprep.subr.bf16.mxu0 %v1413_v38  ;;  %1278 = vmatprep.subr.bf16.mxu1 %v1498_v1 }
  0x38   :  { %1292 = vmatprep.mubr.msk.bf16.mxu1 %vm1499_vm0, %v1498_v1 }
  0x3a   :  { %1192 = vmatpush3.bf16.msra.mxu0 %v1415_v40  ;;  %1279 = vmatpush3.bf16.msra.mxu1 %v1414_v39  ;;  %v616_v39 = vrot.slane %v1599_v31, %v615_v29 }
  0x3b   :  { %1193 = vmatprep.subr.bf16.mxu0 %v1416_v41  ;;  %1280 = vmatprep.subr.bf16.mxu1 %v1498_v1 }
  0x3e   :  { %1194 = vmatpush3.bf16.msra.mxu0 %v1418_v43  ;;  %1281 = vmatpush3.bf16.msra.mxu1 %v1417_v42 }
  0x3f   :  { %1195 = vmatprep.subr.bf16.mxu0 %v1419_v44  ;;  %1282 = vmatprep.subr.bf16.mxu1 %v1498_v1 }
  0x42   :  { %1196 = vmatpush3.bf16.msra.mxu0 %v1421_v46  ;;  %1283 = vmatpush3.bf16.msra.mxu1 %v1420_v45  ;;  %v1448_v45 = vld [vmem:[#allocation2 + $0x1f0] sm:$0xff]   ;;  %v1449_v46 = vld [vmem:[#allocation2 + $0x1f8] sm:$0xff]  }
  0x43   :  { %1197 = vmatprep.subr.bf16.mxu0 %v1422_v47  ;;  %1284 = vmatprep.subr.bf16.mxu1 %v1498_v1  ;;  %v1450_v47 = vld [vmem:[#allocation2 + $0x200] sm:$0xff]  }
  0x46   :  { %1198 = vmatpush3.bf16.msra.mxu0 %v1424_v49  ;;  %1285 = vmatpush3.bf16.msra.mxu1 %v1423_v48  ;;  %v1451_v48 = vld [vmem:[#allocation2 + $0x208] sm:$0xff]   ;;  %v1452_v49 = vld [vmem:[#allocation2 + $0x210] sm:$0xff]  }
  0x47   :  { %1199 = vmatprep.subr.bf16.mxu0 %v1425_v50  ;;  %1286 = vmatprep.subr.bf16.mxu1 %v1498_v1  ;;  %v1453_v50 = vld [vmem:[#allocation2 + $0x218] sm:$0xff]  }
  0x4a   :  { %1200 = vmatpush3.bf16.msra.mxu0 %v1427_v51  ;;  %1287 = vmatpush3.bf16.msra.mxu1 %v1426_v52  ;;  %v1454_v51 = vld [vmem:[#allocation2 + $0x220] sm:$0xff]   ;;  %v1455_v52 = vld [vmem:[#allocation2 + $0x228] sm:$0xff]  }
  0x4b   :  { %1201 = vmatprep.subr.bf16.mxu0 %v1428_v53  ;;  %1288 = vmatprep.subr.bf16.mxu1 %v1498_v1  ;;  %v638_v53 = vsub.s32 1, %v1593_v27 }
  0x4e   :  { %1202 = vmatpush3.bf16.msra.mxu0 %v1430_v54  ;;  %1289 = vmatpush3.bf16.msra.mxu1 %v1429_v55  ;;  %v639_v54 = vrot.slane %v1599_v31, %v638_v53 }
  0x4f   :  { %1203 = vmatprep.subr.bf16.mxu0 %v1431_v56  ;;  %1290 = vmatprep.subr.bf16.mxu1 %v1498_v1 }
  0x52   :  { %1204 = vmatpush3.bf16.msra.mxu0 %v1433_v57  ;;  %1291 = vmatpush3.bf16.msra.mxu1 %v1432_v58 }
  0x53   :  { %1296 = vmatprep.subr.bf16.mxu0 %v1498_v1  ;;  %1316 = vmatprep.subr.bf16.mxu1 %v1498_v1 }
  0x93   :  { %v40_v61 = vpop.permute.xlu0 %39 }
  0x94   :  { %vm41_vm1 = vcmp.eq.s32.totalorder %v35_v60, %v40_v61  ;;  %vm42_vm5 = vcmp.eq.s32.totalorder %v36_v62, %v40_v61  ;;  %vm43_vm7 = vcmp.eq.s32.totalorder %v37_v63, %v40_v61 }
  0x98   :  { %v46_v0 = vpop.permute.xlu0 %45 }
  0x99   :  { %vm47_vm2 = vcmp.eq.s32.totalorder %v35_v60, %v46_v0  ;;  %vm48_vm3 = vcmp.eq.s32.totalorder %v36_v62, %v46_v0  ;;  %vm49_vm4 = vcmp.eq.s32.totalorder %v37_v63, %v46_v0  ;;  %v1456_v62 = vld [vmem:[#allocation2 + $0x230] sm:$0xff]   ;;  %v1457_v63 = vld [vmem:[#allocation2 + $0x238] sm:$0xff]   ;;  %v1458_v0 = vld [vmem:[#allocation2 + $0x240] sm:$0xff]  }
  0x9a   :  { %vm50_vm6 = vmor %vm41_vm1, %vm47_vm2 }
  0x9b   :  { %vm51_vm8 = vmor %vm42_vm5, %vm48_vm3 }
  0x9c   :  { %vm52_vm9 = vmor %vm43_vm7, %vm49_vm4 }
  0x9d   :  { %vm1120_vm10 = vmpackc.low %vm51_vm8, %vm51_vm8 }
  0x9e   :  { %vm1122_vm11 = vmpackc.low %vm50_vm6, %vm50_vm6  ;;  %1121 = vmatprep.mubr.msk.bf16.mxu0 %vm1120_vm10, %v1501_v3 }
  0x9f   :  { %vm1124_vm12 = vmpackc.low %vm52_vm9, %vm52_vm9  ;;  %1123 = vmatmul.mubr.msk.bf16.vlgmr.msra.gmra.mrb[4].mxu0 %vm1122_vm11, %v1501_v3 }
  0xa0   :  { %1293 = vmatmul.mubr.msk.bf16.vlgmr.msra.gmra.mrb[4].mxu1 %vm1124_vm12, %v1501_v3  ;;  %1297 = vmatpush3.bf16.msra.mxu0 %v1434_v2  ;;  %v1459_v2 = vld [vmem:[#allocation2 + $0x248] sm:$0xff]   ;;  %v1460_v3 = vld [vmem:[#allocation2 + $0x250] sm:$0xff]  }
  0xa1   :  { %1298 = vmatprep.subr.bf16.mxu0 %v1498_v1  ;;  %1312 = vmatprep.mubr.msk.bf16.mxu0 %vm1499_vm0, %v1498_v1 }
  0xa2   :  { %1332 = vmatprep.mubr.msk.bf16.mxu1 %vm1499_vm0, %v1498_v1  ;;  %1317 = vmatpush3.bf16.msra.mxu1 %v1442_v11 }
  0xa3   :  { %1318 = vmatprep.subr.bf16.mxu1 %v1498_v1 }
  0xa4   :  { %1299 = vmatpush3.bf16.msra.mxu0 %v1435_v4  ;;  %v1461_v4 = vld [vmem:[#allocation2 + $0x258] sm:$0xff]  }
  0xa5   :  { %1300 = vmatprep.subr.bf16.mxu0 %v1498_v1 }
  0xa6   :  { %1319 = vmatpush3.bf16.msra.mxu1 %v1443_v12 }
  0xa7   :  { %1320 = vmatprep.subr.bf16.mxu1 %v1498_v1 }
  0xa8   :  { %1301 = vmatpush3.bf16.msra.mxu0 %v1436_v5  ;;  %v1462_v5 = vld [vmem:[#allocation2 + $0x260] sm:$0xff]  }
  0xa9   :  { %1302 = vmatprep.subr.bf16.mxu0 %v1498_v1 }
  0xaa   :  { %1321 = vmatpush3.bf16.msra.mxu1 %v1444_v13 }
  0xab   :  { %1322 = vmatprep.subr.bf16.mxu1 %v1498_v1 }
  0xac   :  { %1303 = vmatpush3.bf16.msra.mxu0 %v1437_v6  ;;  %v1463_v6 = vld [vmem:[#allocation2 + $0x268] sm:$0xff]  }
  0xad   :  { %1304 = vmatprep.subr.bf16.mxu0 %v1498_v1 }
  0xae   :  { %1323 = vmatpush3.bf16.msra.mxu1 %v1445_v17  ;;  %v1465_v17 = vld [vmem:[#allocation2 + $0x278] sm:$0xff]  }
  0xaf   :  { %1324 = vmatprep.subr.bf16.mxu1 %v1498_v1 }
  0xb0   :  { %1305 = vmatpush3.bf16.msra.mxu0 %v1438_v7  ;;  %v748_v7 = vsub.s32 2, %v1593_v27 }
  0xb1   :  { %1306 = vmatprep.subr.bf16.mxu0 %v1498_v1 }
  0xb2   :  { %1325 = vmatpush3.bf16.msra.mxu1 %v1446_v25 }
  0xb3   :  { %1326 = vmatprep.subr.bf16.mxu1 %v1498_v1 }
  0xb4   :  { %1307 = vmatpush3.bf16.msra.mxu0 %v1439_v8  ;;  %v749_v8 = vrot.slane %v1599_v31, %v748_v7 }
  0xb5   :  { %1308 = vmatprep.subr.bf16.mxu0 %v1498_v1 }
  0xb6   :  { %1327 = vmatpush3.bf16.msra.mxu1 %v1447_v26 }
  0xb7   :  { %1328 = vmatprep.subr.bf16.mxu1 %v1498_v1 }
  0xb8   :  { %1309 = vmatpush3.bf16.msra.mxu0 %v1440_v9 }
  0xb9   :  { %1310 = vmatprep.subr.bf16.mxu0 %v1498_v1 }
  0xba   :  { %1329 = vmatpush3.bf16.msra.mxu1 %v1448_v45 }
  0xbb   :  { %1330 = vmatprep.subr.bf16.mxu1 %v1498_v1 }
  0xbc   :  { %1311 = vmatpush3.bf16.msra.mxu0 %v1441_v10 }
  0xbd   :  { %1336 = vmatprep.subr.bf16.mxu0 %v1498_v1 }
  0xbe   :  { %1331 = vmatpush3.bf16.msra.mxu1 %v1449_v46 }
  0xbf   :  { %1356 = vmatprep.subr.bf16.mxu1 %v1498_v1 }
 0x108   :  { %v1174_v14 = vpop.f32.mrb[0].mxu0  ;;  %v383_v16 = vpop.f32.mrb[0].mxu1 }
 0x109   :  { %v1175_v15 = vpop.f32.mrb[1].mxu0  ;;  %v1274_v20 = vpop.f32.mrb[1].mxu1 }
 0x10a   :  { %v1176_v18 = vadd.f32 %v1175_v15, %v1174_v14  ;;  %v1177_v19 = vpop.f32.mrb[2].mxu0  ;;  %v386_v22 = vpop.f32.mrb[2].mxu1 }
 0x10b   :  { %v1178_v21 = vpop.f32.mrb[3].mxu0  ;;  %v1275_v24 = vpop.f32.mrb[3].mxu1 }
 0x10c   :  { %v384_v23 = vadd.f32 %v1176_v18, %v383_v16  ;;  %v1464_v16 = vld [vmem:[#allocation2 + $0x270] sm:$0xff]   ;;  %v858_v18 = vsub.s32 3, %v1593_v27 }
 0x10e   :  { %v859_v19 = vrot.slane %v1599_v31, %v858_v18 }
 0x172   :  { %v1205_v28 = vpop.f32.mrb[4].mxu0 }
 0x173   :  { %v607_v30 = vpop.f32.mrb[4].mxu1  ;;  %v1206_v32 = vpop.f32.mrb[5].mxu0 }
 0x174   :  { %v1294_v33 = vpop.f32.mrb[5].mxu1  ;;  %v1207_v34 = vadd.f32 %v1206_v32, %v1205_v28  ;;  %v1208_v35 = vpop.f32.mrb[6].mxu0  ;;  %v968_v28 = vsub.s32 4, %v1593_v27 }
 0x175   :  { %v610_v36 = vpop.f32.mrb[6].mxu1  ;;  %v1209_v37 = vpop.f32.mrb[7].mxu0 }
 0x176   :  { %v568_v38 = vadd.f32 %v1207_v34, %v384_v23  ;;  %v1295_v40 = vpop.f32.mrb[7].mxu1  ;;  %v969_v29 = vrot.slane %v1599_v31, %v968_v28 }
 0x178   :  { %v608_v41 = vadd.f32 %v607_v30, %v568_v38 }
 0x17a   :  { %v617_v42 = vadd.f32 %v616_v39, %v608_v41 }
 0x17c   :  { %v618_v43 = vmax.f32 %v617_v42, 0.0 }
 0x17e   :  { %v635_v44 = vpack.c.bf16 %v618_v43, %v618_v43 }
 0x180   :  { %1313 = vmatmul.mubr.bf16.vlgmr.msra.gmra.mrb[8].mxu0 %v635_v44 }
 0x181   :  { %1352 = vmatprep.mubr.msk.bf16.mxu0 %vm1499_vm0, %v1498_v1  ;;  %1337 = vmatpush3.bf16.msra.mxu0 %v1450_v47 }
 0x182   :  { %1338 = vmatprep.subr.bf16.mxu0 %v1498_v1 }
 0x185   :  { %1339 = vmatpush3.bf16.msra.mxu0 %v1451_v48 }
 0x186   :  { %1340 = vmatprep.subr.bf16.mxu0 %v1498_v1 }
 0x189   :  { %1341 = vmatpush3.bf16.msra.mxu0 %v1452_v49 }
 0x18a   :  { %1342 = vmatprep.subr.bf16.mxu0 %v1498_v1 }
 0x18d   :  { %1343 = vmatpush3.bf16.msra.mxu0 %v1453_v50 }
 0x18e   :  { %1344 = vmatprep.subr.bf16.mxu0 %v1498_v1 }
 0x191   :  { %1345 = vmatpush3.bf16.msra.mxu0 %v1454_v51 }
 0x192   :  { %1346 = vmatprep.subr.bf16.mxu0 %v1498_v1 }
 0x195   :  { %1347 = vmatpush3.bf16.msra.mxu0 %v1455_v52 }
 0x196   :  { %1348 = vmatprep.subr.bf16.mxu0 %v1498_v1 }
 0x199   :  { %1349 = vmatpush3.bf16.msra.mxu0 %v1456_v62 }
 0x19a   :  { %1350 = vmatprep.subr.bf16.mxu0 %v1498_v1 }
 0x19d   :  { %1351 = vmatpush3.bf16.msra.mxu0 %v1457_v63 }
 0x253   :  { %v722_v55 = vpop.f32.mrb[8].mxu0 }
 0x254   :  { %v723_v56 = vadd.f32 %v722_v55, %v639_v54  ;;  %v1314_v57 = vpop.f32.mrb[9].mxu0 }
 0x255   :  { %v725_v58 = vpop.f32.mrb[10].mxu0 }
 0x256   :  { %v728_v59 = vmax.f32 %v723_v56, 0.0  ;;  %v1315_v60 = vpop.f32.mrb[11].mxu0 }
 0x258   :  { %v745_v61 = vpack.c.bf16 %v728_v59, %v728_v59 }
 0x25a   :  { %1333 = vmatmul.mubr.bf16.vlgmr.msra.gmra.mrb[8].mxu1 %v745_v61 }
 0x25b   :  { %1372 = vmatprep.mubr.msk.bf16.mxu1 %vm1499_vm0, %v1498_v1  ;;  %1357 = vmatpush3.bf16.msra.mxu1 %v1458_v0 }
 0x25c   :  { %1358 = vmatprep.subr.bf16.mxu1 %v1498_v1 }
 0x25f   :  { %1359 = vmatpush3.bf16.msra.mxu1 %v1459_v2 }
 0x260   :  { %1360 = vmatprep.subr.bf16.mxu1 %v1498_v1 }
 0x263   :  { %1361 = vmatpush3.bf16.msra.mxu1 %v1460_v3 }
 0x264   :  { %1362 = vmatprep.subr.bf16.mxu1 %v1498_v1 }
 0x267   :  { %1363 = vmatpush3.bf16.msra.mxu1 %v1461_v4 }
 0x268   :  { %1364 = vmatprep.subr.bf16.mxu1 %v1498_v1 }
 0x26b   :  { %1365 = vmatpush3.bf16.msra.mxu1 %v1462_v5 }
 0x26c   :  { %1366 = vmatprep.subr.bf16.mxu1 %v1498_v1 }
 0x26f   :  { %1367 = vmatpush3.bf16.msra.mxu1 %v1463_v6 }
 0x270   :  { %1368 = vmatprep.subr.bf16.mxu1 %v1498_v1 }
 0x273   :  { %1369 = vmatpush3.bf16.msra.mxu1 %v1464_v16 }
 0x274   :  { %1370 = vmatprep.subr.bf16.mxu1 %v1498_v1 }
 0x277   :  { %1371 = vmatpush3.bf16.msra.mxu1 %v1465_v17 }
 0x32d   :  { %v832_v9 = vpop.f32.mrb[8].mxu1 }
 0x32e   :  { %v833_v10 = vadd.f32 %v832_v9, %v749_v8  ;;  %v1334_v11 = vpop.f32.mrb[9].mxu1 }
 0x32f   :  { %v835_v12 = vpop.f32.mrb[10].mxu1 }
 0x330   :  { %v838_v13 = vmax.f32 %v833_v10, 0.0  ;;  %v1335_v14 = vpop.f32.mrb[11].mxu1 }
 0x332   :  { %v855_v15 = vpack.c.bf16 %v838_v13, %v838_v13 }
 0x334   :  { %1353 = vmatmul.mubr.bf16.vlgmr.msra.gmra.mrb[12].mxu0 %v855_v15 }
 0x407   :  { %v942_v20 = vpop.f32.mrb[12].mxu0 }
 0x408   :  { %v943_v21 = vadd.f32 %v942_v20, %v859_v19  ;;  %v1354_v22 = vpop.f32.mrb[13].mxu0 }
 0x409   :  { %v945_v23 = vpop.f32.mrb[14].mxu0 }
 0x40a   :  { %v948_v24 = vmax.f32 %v943_v21, 0.0  ;;  %v1355_v25 = vpop.f32.mrb[15].mxu0 }
 0x40c   :  { %v965_v26 = vpack.c.bf16 %v948_v24, %v948_v24 }
 0x40e   :  { %1373 = vmatmul.mubr.bf16.vlgmr.msra.gmra.mrb[12].mxu1 %v965_v26 }
 0x4e1   :  { %v1052_v30 = vpop.f32.mrb[12].mxu1 }
 0x4e2   :  { %v1053_v1 = vadd.f32 %v1052_v30, %v969_v29  ;;  %v1374_v32 = vpop.f32.mrb[13].mxu1 }
 0x4e3   :  { %v1055_v33 = vpop.f32.mrb[14].mxu1 }
 0x4e4   :  { %v1058_v34 = vsub.f32 0.0, %v1053_v1  ;;  %v1375_v35 = vpop.f32.mrb[15].mxu1 }
 0x4e6   :  { %v1059_v36 = vmul.f32 1.442695, %v1058_v34 }
 0x4e8   :  { %1466 = vpow2.f32 %v1059_v36 }
 0x4f2   :  { %v1467_v37 = vpop.eup %1466 }
 0x4f3   :  { %v1061_v38 = vadd.f32 1.0, %v1467_v37 }
 0x4f5   :  { %1468 = vrcp.f32 %v1061_v38 }
 0x4ff   :  { %v1469_v39 = vpop.eup %1468 }
 0x500   :  { %1063 = vst [vmem:[%s1637_s4] sm:$0xff] %v1469_v39 }
 0x501   :  { %1068 = vsyncpa [#allocation3], 1 }

</bundles_post_ra>
